<compile_context>
chip_gen: v7x
topology: tpu7x:2x2x1
jax: 0.10.0
libtpu: 0.0.40
codegen_flags: <defaults>
</compile_context>

<pallas_src>
import functools

import jax
import jax.numpy as jnp
from jax import lax
from jax.experimental import pallas as pl
from jax.experimental.pallas import tpu as pltpu


def _resblock_kernel(x_ref, s1_ref, b1_ref, w1_ref, cb1_ref,
                     s2_ref, b2_ref, w2_ref, cb2_ref, o_ref, *, H, W):
    # x_ref : (Cin, H*W)          o_ref : (Cout, H*W)
    # s*/b* : (C, 1)  folded-BN scale/bias      cb* : (Cout, 1) conv bias
    # w*_ref: (Cout, 9*Cin)  = conv weight reordered as [co, (ki, kj, ci)]
    HW = H * W
    x = x_ref[...].astype(jnp.float32)                       # (Cin, HW)

    # Lane-index based edge masks (only the column masks are needed; row
    # out-of-range taps fall off the ends of the flat array and are zero-filled).
    col = lax.broadcasted_iota(jnp.int32, (1, HW), 1) % W
    not_first_col = col != 0          # invalid source when kernel column offset = -1
    not_last_col = col != (W - 1)     # invalid source when kernel column offset = +1

    def shift_flat(h, d):
        # out[:, p] = h[:, p + d] if 0 <= p + d < HW else 0   (static d)
        c = h.shape[0]
        if d == 0:
            return h
        zeros = jnp.zeros((c, abs(d)), h.dtype)
        if d > 0:
            return jnp.concatenate([h[:, d:], zeros], axis=1)
        return jnp.concatenate([zeros, h[:, :HW + d]], axis=1)

    def conv3x3(h, w_ref, cb_ref):
        # h: (Cin_, HW) -> (Cout, HW); single im2col matmul, K = 9*Cin_.
        taps = []
        for ki in range(3):
            di = ki - 1
            for kj in range(3):
                dj = kj - 1
                t = shift_flat(h, di * W + dj)
                if dj == -1:
                    t = jnp.where(not_first_col, t, 0.0)
                elif dj == 1:
                    t = jnp.where(not_last_col, t, 0.0)
                taps.append(t)
        patches = jnp.concatenate(taps, axis=0)               # (9*Cin_, HW)
        return jnp.dot(w_ref[...], patches,
                       preferred_element_type=jnp.float32) + cb_ref[...]

    # ---- BN1 (folded) + LeakyReLU(0.2) ----
    h = x * s1_ref[...] + b1_ref[...]
    h = jnp.where(h > 0, h, 0.2 * h)
    # ---- Conv1: 3x3, stride 1, pad 1 ----
    h = conv3x3(h, w1_ref, cb1_ref)
    # ---- BN2 (folded) + LeakyReLU(0.2) ----
    h = h * s2_ref[...] + b2_ref[...]
    h = jnp.where(h > 0, h, 0.2 * h)
    # ---- Conv2: 3x3, stride 1, pad 1 ----
    y = conv3x3(h, w2_ref, cb2_ref)
    # ---- residual add (Identity branch; Cin == Cout) ----
    o_ref[...] = (y + x).astype(o_ref.dtype)


def resblock_pallas(x_nchw, params):
    """x_nchw: (N, C, H, W) float32 (PyTorch layout). Returns (N, C, H, W)."""
    s1, b1, w1, cb1, s2, b2, w2, cb2 = params
    N, C, H, W = x_nchw.shape
    kh, kw, Cin, Cout = w1.shape
    assert (kh, kw) == (3, 3) and Cin == C
    assert Cout == C, "Identity skip requires in_channels == out_channels"
    HW = H * W

    # Free relayouts (no transposes): NCHW -> (N, C, H*W)
    x_flat = x_nchw.reshape(N, C, HW)

    # Fold conv weights to (Cout, 9*Cin) with row order (ki, kj, ci) matching the
    # kernel's tap concatenation order.
    w1_mat = jnp.transpose(w1, (3, 0, 1, 2)).reshape(Cout, 9 * Cin)
    w2_mat = jnp.transpose(w2, (3, 0, 1, 2)).reshape(Cout, 9 * Cout)
    s1c, b1c = s1.reshape(C, 1), b1.reshape(C, 1)
    s2c, b2c = s2.reshape(Cout, 1), b2.reshape(Cout, 1)
    cb1c, cb2c = cb1.reshape(Cout, 1), cb2.reshape(Cout, 1)

    def full(a):
        nd = a.ndim
        return pl.BlockSpec(a.shape, lambda n, _nd=nd: (0,) * _nd)

    kernel = functools.partial(_resblock_kernel, H=H, W=W)

    out = pl.pallas_call(
        kernel,
        out_shape=jax.ShapeDtypeStruct((N, Cout, HW), x_nchw.dtype),
        grid_spec=pltpu.PrefetchScalarGridSpec(
            num_scalar_prefetch=0,
            grid=(N,),
            in_specs=[
                pl.BlockSpec((pl.Squeezed(), C, HW), lambda n: (n, 0, 0)),
                full(s1c), full(b1c), full(w1_mat), full(cb1c),
                full(s2c), full(b2c), full(w2_mat), full(cb2c),
            ],
            out_specs=pl.BlockSpec((pl.Squeezed(), Cout, HW),
                                   lambda n: (n, 0, 0)),
        ),
        compiler_params=pltpu.CompilerParams(dimension_semantics=("parallel",)),
    )(x_flat, s1c, b1c, w1_mat, cb1c, s2c, b2c, w2_mat, cb2c)

    return out.reshape(N, Cout, H, W)


def _reference(x_nchw, params):
    """Pure-JAX reference (lax conv) for verification."""
    s1, b1, w1, cb1, s2, b2, w2, cb2 = params
    x = jnp.transpose(x_nchw, (0, 2, 3, 1))  # NHWC
    dn = lax.conv_dimension_numbers(x.shape, w1.shape, ('NHWC', 'HWIO', 'NHWC'))

    def bn_lrelu(h, s, b):
        h = h * s.reshape(1, 1, 1, -1) + b.reshape(1, 1, 1, -1)
        return jnp.where(h > 0, h, 0.2 * h)

    h = bn_lrelu(x, s1, b1)
    h = lax.conv_general_dilated(h, w1, (1, 1), ((1, 1), (1, 1)),
                                 dimension_numbers=dn) + cb1.reshape(1, 1, 1, -1)
    h = bn_lrelu(h, s2, b2)
    h = lax.conv_general_dilated(h, w2, (1, 1), ((1, 1), (1, 1)),
                                 dimension_numbers=dn) + cb2.reshape(1, 1, 1, -1)
    return jnp.transpose(h + x, (0, 3, 1, 2))


def make_params(key, c_in, c_out):
    ks = jax.random.split(key, 12)
    eps = 1e-5
    # BatchNorm1 (running stats folded -> scale/bias)
    g1 = 1.0 + 0.1 * jax.random.normal(ks[0], (c_in,), jnp.float32)
    be1 = 0.1 * jax.random.normal(ks[1], (c_in,), jnp.float32)
    m1 = 0.1 * jax.random.normal(ks[2], (c_in,), jnp.float32)
    v1 = 1.0 + 0.1 * jax.random.uniform(ks[3], (c_in,), jnp.float32)
    s1 = g1 / jnp.sqrt(v1 + eps)
    b1 = be1 - m1 * s1
    # Conv1 (HWIO)
    w1 = 0.1 * jax.random.normal(ks[4], (3, 3, c_in, c_out), jnp.float32)
    cb1 = 0.05 * jax.random.normal(ks[5], (c_out,), jnp.float32)
    # BatchNorm2
    g2 = 1.0 + 0.1 * jax.random.normal(ks[6], (c_out,), jnp.float32)
    be2 = 0.1 * jax.random.normal(ks[7], (c_out,), jnp.float32)
    m2 = 0.1 * jax.random.normal(ks[8], (c_out,), jnp.float32)
    v2 = 1.0 + 0.1 * jax.random.uniform(ks[9], (c_out,), jnp.float32)
    s2 = g2 / jnp.sqrt(v2 + eps)
    b2 = be2 - m2 * s2
    # Conv2 (HWIO)
    w2 = 0.1 * jax.random.normal(ks[10], (3, 3, c_out, c_out), jnp.float32)
    cb2 = 0.05 * jax.random.normal(ks[11], (c_out,), jnp.float32)
    return (s1, b1, w1, cb1, s2, b2, w2, cb2)


if __name__ == "__main__":
    key = jax.random.PRNGKey(0)
    N, C, H, W = 2, 4, 16, 16          # in_channels == out_channels (Identity skip)
    x = jax.random.normal(key, (N, C, H, W), jnp.float32)
    params = make_params(jax.random.fold_in(key, 1), C, C)

    y = jax.block_until_ready(resblock_pallas(x, params))

    y_ref = _reference(x, params)
    assert y.shape == (N, C, H, W)
    assert jnp.allclose(y, y_ref, atol=1e-4, rtol=1e-4), "mismatch vs JAX reference"
    print("KERNEL_OK")
</pallas_src>

<mosaic_0001>
module attributes {stable_mosaic.version = 11 : i64} {
  func.func @_resblock_kernel(%arg0: i32, %arg1: memref<1x4x256xf32, #tpu.memory_space<vmem>>, %arg2: memref<4x1xf32, #tpu.memory_space<vmem>>, %arg3: memref<4x1xf32, #tpu.memory_space<vmem>>, %arg4: memref<4x36xf32, #tpu.memory_space<vmem>>, %arg5: memref<4x1xf32, #tpu.memory_space<vmem>>, %arg6: memref<4x1xf32, #tpu.memory_space<vmem>>, %arg7: memref<4x1xf32, #tpu.memory_space<vmem>>, %arg8: memref<4x36xf32, #tpu.memory_space<vmem>>, %arg9: memref<4x1xf32, #tpu.memory_space<vmem>>, %arg10: memref<1x4x256xf32, #tpu.memory_space<vmem>>) attributes {dimension_semantics = [#tpu.dimension_semantics<parallel>], iteration_bounds = array<i64: 2>, scalar_prefetch = 0 : i64, scratch_operands = 0 : i64, tpu.core_type = #tpu.core_type<tc>, window_params = [{transform_indices = @transform_0, window_bounds = array<i64: 1, 4, 256>}, {pipeline_mode = #tpu.pipeline_mode<synchronous>, transform_indices = @transform_1, window_bounds = array<i64: 4, 1>}, {pipeline_mode = #tpu.pipeline_mode<synchronous>, transform_indices = @transform_2, window_bounds = array<i64: 4, 1>}, {pipeline_mode = #tpu.pipeline_mode<synchronous>, transform_indices = @transform_3, window_bounds = array<i64: 4, 36>}, {pipeline_mode = #tpu.pipeline_mode<synchronous>, transform_indices = @transform_4, window_bounds = array<i64: 4, 1>}, {pipeline_mode = #tpu.pipeline_mode<synchronous>, transform_indices = @transform_5, window_bounds = array<i64: 4, 1>}, {pipeline_mode = #tpu.pipeline_mode<synchronous>, transform_indices = @transform_6, window_bounds = array<i64: 4, 1>}, {pipeline_mode = #tpu.pipeline_mode<synchronous>, transform_indices = @transform_7, window_bounds = array<i64: 4, 36>}, {pipeline_mode = #tpu.pipeline_mode<synchronous>, transform_indices = @transform_8, window_bounds = array<i64: 4, 1>}, {transform_indices = @transform_9, window_bounds = array<i64: 1, 4, 256>}]} {
    %c0 = arith.constant 0 : index
    %c0_0 = arith.constant 0 : index
    %c0_1 = arith.constant 0 : index
    %0 = vector.load %arg1[%c0, %c0_0, %c0_1] : memref<1x4x256xf32, #tpu.memory_space<vmem>>, vector<1x4x256xf32>
    %1 = vector.shape_cast %0 : vector<1x4x256xf32> to vector<4x256xf32>
    %2 = tpu.iota {dimensions = array<i32: 1>} : vector<1x256xi32>
    %c16_i32 = arith.constant 16 : i32
    %c0_i32 = arith.constant 0 : i32
    %3 = arith.cmpi eq, %c16_i32, %c0_i32 : i32
    %c1_i32 = arith.constant 1 : i32
    %4 = arith.select %3, %c1_i32, %c16_i32 : i32
    %5 = vector.broadcast %4 : i32 to vector<1x256xi32>
    %6 = arith.remsi %2, %5 : vector<1x256xi32>
    %c0_i32_2 = arith.constant 0 : i32
    %7 = vector.broadcast %c0_i32_2 : i32 to vector<1x256xi32>
    %8 = arith.cmpi ne, %6, %7 : vector<1x256xi32>
    %c0_i32_3 = arith.constant 0 : i32
    %9 = vector.broadcast %c0_i32_3 : i32 to vector<1x256xi32>
    %10 = arith.cmpi slt, %6, %9 : vector<1x256xi32>
    %c0_i32_4 = arith.constant 0 : i32
    %11 = arith.cmpi slt, %4, %c0_i32_4 : i32
    %12 = vector.broadcast %11 : i1 to vector<1x256xi1>
    %13 = vector.broadcast %12 : vector<1x256xi1> to vector<1x256xi1>
    %14 = arith.xori %10, %13 : vector<1x256xi1>
    %15 = arith.andi %14, %8 : vector<1x256xi1>
    %16 = vector.broadcast %4 : i32 to vector<1x256xi32>
    %17 = arith.addi %6, %16 : vector<1x256xi32>
    %18 = arith.select %15, %17, %6 : vector<1x256xi1>, vector<1x256xi32>
    %c0_i32_5 = arith.constant 0 : i32
    %19 = vector.broadcast %c0_i32_5 : i32 to vector<1x256xi32>
    %20 = arith.cmpi ne, %18, %19 : vector<1x256xi32>
    %c15_i32 = arith.constant 15 : i32
    %21 = vector.broadcast %c15_i32 : i32 to vector<1x256xi32>
    %22 = arith.cmpi ne, %18, %21 : vector<1x256xi32>
    %c0_6 = arith.constant 0 : index
    %c0_7 = arith.constant 0 : index
    %23 = vector.load %arg2[%c0_6, %c0_7] : memref<4x1xf32, #tpu.memory_space<vmem>>, vector<4x1xf32>
    %24 = vector.broadcast %23 : vector<4x1xf32> to vector<4x256xf32>
    %25 = arith.mulf %1, %24 : vector<4x256xf32>
    %c0_8 = arith.constant 0 : index
    %c0_9 = arith.constant 0 : index
    %26 = vector.load %arg3[%c0_8, %c0_9] : memref<4x1xf32, #tpu.memory_space<vmem>>, vector<4x1xf32>
    %27 = vector.broadcast %26 : vector<4x1xf32> to vector<4x256xf32>
    %28 = arith.addf %25, %27 : vector<4x256xf32>
    %cst = arith.constant 0.000000e+00 : f32
    %29 = vector.broadcast %cst : f32 to vector<4x256xf32>
    %30 = arith.cmpf ogt, %28, %29 : vector<4x256xf32>
    %cst_10 = arith.constant 2.000000e-01 : f32
    %31 = vector.broadcast %cst_10 : f32 to vector<4x256xf32>
    %32 = arith.mulf %31, %28 : vector<4x256xf32>
    %33 = arith.select %30, %28, %32 : vector<4x256xi1>, vector<4x256xf32>
    %cst_11 = arith.constant 0.000000e+00 : f32
    %34 = vector.broadcast %cst_11 : f32 to vector<4x17xf32>
    %35 = vector.extract_strided_slice %33 {offsets = [0, 0], sizes = [4, 239], strides = [1, 1]} : vector<4x256xf32> to vector<4x239xf32>
    %36 = tpu.concatenate %34, %35 in 1 : vector<4x17xf32>, vector<4x239xf32> -> vector<4x256xf32>
    %cst_12 = arith.constant 0.000000e+00 : f32
    %37 = vector.shape_cast %20 : vector<1x256xi1> to vector<1x256xi1>
    %38 = vector.broadcast %37 : vector<1x256xi1> to vector<4x256xi1>
    %39 = vector.broadcast %cst_12 : f32 to vector<4x256xf32>
    %40 = arith.select %38, %36, %39 : vector<4x256xi1>, vector<4x256xf32>
    %cst_13 = arith.constant 0.000000e+00 : f32
    %41 = vector.broadcast %cst_13 : f32 to vector<4x16xf32>
    %42 = vector.extract_strided_slice %33 {offsets = [0, 0], sizes = [4, 240], strides = [1, 1]} : vector<4x256xf32> to vector<4x240xf32>
    %43 = tpu.concatenate %41, %42 in 1 : vector<4x16xf32>, vector<4x240xf32> -> vector<4x256xf32>
    %cst_14 = arith.constant 0.000000e+00 : f32
    %44 = vector.broadcast %cst_14 : f32 to vector<4x15xf32>
    %45 = vector.extract_strided_slice %33 {offsets = [0, 0], sizes = [4, 241], strides = [1, 1]} : vector<4x256xf32> to vector<4x241xf32>
    %46 = tpu.concatenate %44, %45 in 1 : vector<4x15xf32>, vector<4x241xf32> -> vector<4x256xf32>
    %cst_15 = arith.constant 0.000000e+00 : f32
    %47 = vector.shape_cast %22 : vector<1x256xi1> to vector<1x256xi1>
    %48 = vector.broadcast %47 : vector<1x256xi1> to vector<4x256xi1>
    %49 = vector.broadcast %cst_15 : f32 to vector<4x256xf32>
    %50 = arith.select %48, %46, %49 : vector<4x256xi1>, vector<4x256xf32>
    %cst_16 = arith.constant 0.000000e+00 : f32
    %51 = vector.broadcast %cst_16 : f32 to vector<4x1xf32>
    %52 = vector.extract_strided_slice %33 {offsets = [0, 0], sizes = [4, 255], strides = [1, 1]} : vector<4x256xf32> to vector<4x255xf32>
    %53 = tpu.concatenate %51, %52 in 1 : vector<4x1xf32>, vector<4x255xf32> -> vector<4x256xf32>
    %cst_17 = arith.constant 0.000000e+00 : f32
    %54 = vector.shape_cast %20 : vector<1x256xi1> to vector<1x256xi1>
    %55 = vector.broadcast %54 : vector<1x256xi1> to vector<4x256xi1>
    %56 = vector.broadcast %cst_17 : f32 to vector<4x256xf32>
    %57 = arith.select %55, %53, %56 : vector<4x256xi1>, vector<4x256xf32>
    %cst_18 = arith.constant 0.000000e+00 : f32
    %58 = vector.broadcast %cst_18 : f32 to vector<4x1xf32>
    %59 = vector.extract_strided_slice %33 {offsets = [0, 1], sizes = [4, 255], strides = [1, 1]} : vector<4x256xf32> to vector<4x255xf32>
    %60 = tpu.concatenate %59, %58 in 1 : vector<4x255xf32>, vector<4x1xf32> -> vector<4x256xf32>
    %cst_19 = arith.constant 0.000000e+00 : f32
    %61 = vector.shape_cast %22 : vector<1x256xi1> to vector<1x256xi1>
    %62 = vector.broadcast %61 : vector<1x256xi1> to vector<4x256xi1>
    %63 = vector.broadcast %cst_19 : f32 to vector<4x256xf32>
    %64 = arith.select %62, %60, %63 : vector<4x256xi1>, vector<4x256xf32>
    %cst_20 = arith.constant 0.000000e+00 : f32
    %65 = vector.broadcast %cst_20 : f32 to vector<4x15xf32>
    %66 = vector.extract_strided_slice %33 {offsets = [0, 15], sizes = [4, 241], strides = [1, 1]} : vector<4x256xf32> to vector<4x241xf32>
    %67 = tpu.concatenate %66, %65 in 1 : vector<4x241xf32>, vector<4x15xf32> -> vector<4x256xf32>
    %cst_21 = arith.constant 0.000000e+00 : f32
    %68 = vector.shape_cast %20 : vector<1x256xi1> to vector<1x256xi1>
    %69 = vector.broadcast %68 : vector<1x256xi1> to vector<4x256xi1>
    %70 = vector.broadcast %cst_21 : f32 to vector<4x256xf32>
    %71 = arith.select %69, %67, %70 : vector<4x256xi1>, vector<4x256xf32>
    %cst_22 = arith.constant 0.000000e+00 : f32
    %72 = vector.broadcast %cst_22 : f32 to vector<4x16xf32>
    %73 = vector.extract_strided_slice %33 {offsets = [0, 16], sizes = [4, 240], strides = [1, 1]} : vector<4x256xf32> to vector<4x240xf32>
    %74 = tpu.concatenate %73, %72 in 1 : vector<4x240xf32>, vector<4x16xf32> -> vector<4x256xf32>
    %cst_23 = arith.constant 0.000000e+00 : f32
    %75 = vector.broadcast %cst_23 : f32 to vector<4x17xf32>
    %76 = vector.extract_strided_slice %33 {offsets = [0, 17], sizes = [4, 239], strides = [1, 1]} : vector<4x256xf32> to vector<4x239xf32>
    %77 = tpu.concatenate %76, %75 in 1 : vector<4x239xf32>, vector<4x17xf32> -> vector<4x256xf32>
    %cst_24 = arith.constant 0.000000e+00 : f32
    %78 = vector.shape_cast %22 : vector<1x256xi1> to vector<1x256xi1>
    %79 = vector.broadcast %78 : vector<1x256xi1> to vector<4x256xi1>
    %80 = vector.broadcast %cst_24 : f32 to vector<4x256xf32>
    %81 = arith.select %79, %77, %80 : vector<4x256xi1>, vector<4x256xf32>
    %82 = tpu.concatenate %40, %43, %50, %57, %33, %64, %71, %74, %81 in 0 : vector<4x256xf32>, vector<4x256xf32>, vector<4x256xf32>, vector<4x256xf32>, vector<4x256xf32>, vector<4x256xf32>, vector<4x256xf32>, vector<4x256xf32>, vector<4x256xf32> -> vector<36x256xf32>
    %c0_25 = arith.constant 0 : index
    %c0_26 = arith.constant 0 : index
    %83 = vector.load %arg4[%c0_25, %c0_26] : memref<4x36xf32, #tpu.memory_space<vmem>>, vector<4x36xf32>
    %cst_27 = arith.constant dense<0.000000e+00> : vector<4x256xf32>
    %84 = tpu.matmul %83, %82, %cst_27 {dimension_numbers = #tpu.dot_dimension_numbers<[1], [0], [0], [1], [0, 0, 1, 1], [], []>} : vector<4x36xf32>, vector<36x256xf32>, vector<4x256xf32> -> vector<4x256xf32>
    %c0_28 = arith.constant 0 : index
    %c0_29 = arith.constant 0 : index
    %85 = vector.load %arg5[%c0_28, %c0_29] : memref<4x1xf32, #tpu.memory_space<vmem>>, vector<4x1xf32>
    %86 = vector.broadcast %85 : vector<4x1xf32> to vector<4x256xf32>
    %87 = arith.addf %84, %86 : vector<4x256xf32>
    %c0_30 = arith.constant 0 : index
    %c0_31 = arith.constant 0 : index
    %88 = vector.load %arg6[%c0_30, %c0_31] : memref<4x1xf32, #tpu.memory_space<vmem>>, vector<4x1xf32>
    %89 = vector.broadcast %88 : vector<4x1xf32> to vector<4x256xf32>
    %90 = arith.mulf %87, %89 : vector<4x256xf32>
    %c0_32 = arith.constant 0 : index
    %c0_33 = arith.constant 0 : index
    %91 = vector.load %arg7[%c0_32, %c0_33] : memref<4x1xf32, #tpu.memory_space<vmem>>, vector<4x1xf32>
    %92 = vector.broadcast %91 : vector<4x1xf32> to vector<4x256xf32>
    %93 = arith.addf %90, %92 : vector<4x256xf32>
    %cst_34 = arith.constant 0.000000e+00 : f32
    %94 = vector.broadcast %cst_34 : f32 to vector<4x256xf32>
    %95 = arith.cmpf ogt, %93, %94 : vector<4x256xf32>
    %cst_35 = arith.constant 2.000000e-01 : f32
    %96 = vector.broadcast %cst_35 : f32 to vector<4x256xf32>
    %97 = arith.mulf %96, %93 : vector<4x256xf32>
    %98 = arith.select %95, %93, %97 : vector<4x256xi1>, vector<4x256xf32>
    %cst_36 = arith.constant 0.000000e+00 : f32
    %99 = vector.broadcast %cst_36 : f32 to vector<4x17xf32>
    %100 = vector.extract_strided_slice %98 {offsets = [0, 0], sizes = [4, 239], strides = [1, 1]} : vector<4x256xf32> to vector<4x239xf32>
    %101 = tpu.concatenate %99, %100 in 1 : vector<4x17xf32>, vector<4x239xf32> -> vector<4x256xf32>
    %cst_37 = arith.constant 0.000000e+00 : f32
    %102 = vector.shape_cast %20 : vector<1x256xi1> to vector<1x256xi1>
    %103 = vector.broadcast %102 : vector<1x256xi1> to vector<4x256xi1>
    %104 = vector.broadcast %cst_37 : f32 to vector<4x256xf32>
    %105 = arith.select %103, %101, %104 : vector<4x256xi1>, vector<4x256xf32>
    %cst_38 = arith.constant 0.000000e+00 : f32
    %106 = vector.broadcast %cst_38 : f32 to vector<4x16xf32>
    %107 = vector.extract_strided_slice %98 {offsets = [0, 0], sizes = [4, 240], strides = [1, 1]} : vector<4x256xf32> to vector<4x240xf32>
    %108 = tpu.concatenate %106, %107 in 1 : vector<4x16xf32>, vector<4x240xf32> -> vector<4x256xf32>
    %cst_39 = arith.constant 0.000000e+00 : f32
    %109 = vector.broadcast %cst_39 : f32 to vector<4x15xf32>
    %110 = vector.extract_strided_slice %98 {offsets = [0, 0], sizes = [4, 241], strides = [1, 1]} : vector<4x256xf32> to vector<4x241xf32>
    %111 = tpu.concatenate %109, %110 in 1 : vector<4x15xf32>, vector<4x241xf32> -> vector<4x256xf32>
    %cst_40 = arith.constant 0.000000e+00 : f32
    %112 = vector.shape_cast %22 : vector<1x256xi1> to vector<1x256xi1>
    %113 = vector.broadcast %112 : vector<1x256xi1> to vector<4x256xi1>
    %114 = vector.broadcast %cst_40 : f32 to vector<4x256xf32>
    %115 = arith.select %113, %111, %114 : vector<4x256xi1>, vector<4x256xf32>
    %cst_41 = arith.constant 0.000000e+00 : f32
    %116 = vector.broadcast %cst_41 : f32 to vector<4x1xf32>
    %117 = vector.extract_strided_slice %98 {offsets = [0, 0], sizes = [4, 255], strides = [1, 1]} : vector<4x256xf32> to vector<4x255xf32>
    %118 = tpu.concatenate %116, %117 in 1 : vector<4x1xf32>, vector<4x255xf32> -> vector<4x256xf32>
    %cst_42 = arith.constant 0.000000e+00 : f32
    %119 = vector.shape_cast %20 : vector<1x256xi1> to vector<1x256xi1>
    %120 = vector.broadcast %119 : vector<1x256xi1> to vector<4x256xi1>
    %121 = vector.broadcast %cst_42 : f32 to vector<4x256xf32>
    %122 = arith.select %120, %118, %121 : vector<4x256xi1>, vector<4x256xf32>
    %cst_43 = arith.constant 0.000000e+00 : f32
    %123 = vector.broadcast %cst_43 : f32 to vector<4x1xf32>
    %124 = vector.extract_strided_slice %98 {offsets = [0, 1], sizes = [4, 255], strides = [1, 1]} : vector<4x256xf32> to vector<4x255xf32>
    %125 = tpu.concatenate %124, %123 in 1 : vector<4x255xf32>, vector<4x1xf32> -> vector<4x256xf32>
    %cst_44 = arith.constant 0.000000e+00 : f32
    %126 = vector.shape_cast %22 : vector<1x256xi1> to vector<1x256xi1>
    %127 = vector.broadcast %126 : vector<1x256xi1> to vector<4x256xi1>
    %128 = vector.broadcast %cst_44 : f32 to vector<4x256xf32>
    %129 = arith.select %127, %125, %128 : vector<4x256xi1>, vector<4x256xf32>
    %cst_45 = arith.constant 0.000000e+00 : f32
    %130 = vector.broadcast %cst_45 : f32 to vector<4x15xf32>
    %131 = vector.extract_strided_slice %98 {offsets = [0, 15], sizes = [4, 241], strides = [1, 1]} : vector<4x256xf32> to vector<4x241xf32>
    %132 = tpu.concatenate %131, %130 in 1 : vector<4x241xf32>, vector<4x15xf32> -> vector<4x256xf32>
    %cst_46 = arith.constant 0.000000e+00 : f32
    %133 = vector.shape_cast %20 : vector<1x256xi1> to vector<1x256xi1>
    %134 = vector.broadcast %133 : vector<1x256xi1> to vector<4x256xi1>
    %135 = vector.broadcast %cst_46 : f32 to vector<4x256xf32>
    %136 = arith.select %134, %132, %135 : vector<4x256xi1>, vector<4x256xf32>
    %cst_47 = arith.constant 0.000000e+00 : f32
    %137 = vector.broadcast %cst_47 : f32 to vector<4x16xf32>
    %138 = vector.extract_strided_slice %98 {offsets = [0, 16], sizes = [4, 240], strides = [1, 1]} : vector<4x256xf32> to vector<4x240xf32>
    %139 = tpu.concatenate %138, %137 in 1 : vector<4x240xf32>, vector<4x16xf32> -> vector<4x256xf32>
    %cst_48 = arith.constant 0.000000e+00 : f32
    %140 = vector.broadcast %cst_48 : f32 to vector<4x17xf32>
    %141 = vector.extract_strided_slice %98 {offsets = [0, 17], sizes = [4, 239], strides = [1, 1]} : vector<4x256xf32> to vector<4x239xf32>
    %142 = tpu.concatenate %141, %140 in 1 : vector<4x239xf32>, vector<4x17xf32> -> vector<4x256xf32>
    %cst_49 = arith.constant 0.000000e+00 : f32
    %143 = vector.shape_cast %22 : vector<1x256xi1> to vector<1x256xi1>
    %144 = vector.broadcast %143 : vector<1x256xi1> to vector<4x256xi1>
    %145 = vector.broadcast %cst_49 : f32 to vector<4x256xf32>
    %146 = arith.select %144, %142, %145 : vector<4x256xi1>, vector<4x256xf32>
    %147 = tpu.concatenate %105, %108, %115, %122, %98, %129, %136, %139, %146 in 0 : vector<4x256xf32>, vector<4x256xf32>, vector<4x256xf32>, vector<4x256xf32>, vector<4x256xf32>, vector<4x256xf32>, vector<4x256xf32>, vector<4x256xf32>, vector<4x256xf32> -> vector<36x256xf32>
    %c0_50 = arith.constant 0 : index
    %c0_51 = arith.constant 0 : index
    %148 = vector.load %arg8[%c0_50, %c0_51] : memref<4x36xf32, #tpu.memory_space<vmem>>, vector<4x36xf32>
    %cst_52 = arith.constant dense<0.000000e+00> : vector<4x256xf32>
    %149 = tpu.matmul %148, %147, %cst_52 {dimension_numbers = #tpu.dot_dimension_numbers<[1], [0], [0], [1], [0, 0, 1, 1], [], []>} : vector<4x36xf32>, vector<36x256xf32>, vector<4x256xf32> -> vector<4x256xf32>
    %c0_53 = arith.constant 0 : index
    %c0_54 = arith.constant 0 : index
    %150 = vector.load %arg9[%c0_53, %c0_54] : memref<4x1xf32, #tpu.memory_space<vmem>>, vector<4x1xf32>
    %151 = vector.broadcast %150 : vector<4x1xf32> to vector<4x256xf32>
    %152 = arith.addf %149, %151 : vector<4x256xf32>
    %153 = arith.addf %152, %1 : vector<4x256xf32>
    %c0_55 = arith.constant 0 : index
    %c0_56 = arith.constant 0 : index
    %c0_57 = arith.constant 0 : index
    %154 = vector.load %arg10[%c0_55, %c0_56, %c0_57] : memref<1x4x256xf32, #tpu.memory_space<vmem>>, vector<1x4x256xf32>
    %155 = vector.shape_cast %154 : vector<1x4x256xf32> to vector<4x256xf32>
    %156 = vector.shape_cast %153 : vector<4x256xf32> to vector<1x4x256xf32>
    tpu.vector_store %arg10[%c0_55, %c0_56, %c0_57], %156 {strides = array<i32>} : memref<1x4x256xf32, #tpu.memory_space<vmem>>, vector<1x4x256xf32>,
    return
  }
  func.func @transform_0(%arg0: i32) -> (i32, i32, i32) {
    %c0_i32 = arith.constant 0 : i32
    %c0_i32_0 = arith.constant 0 : i32
    %c0_i32_1 = arith.constant 0 : i32
    return %arg0, %c0_i32, %c0_i32_0 : i32, i32, i32
  }
  func.func @transform_1(%arg0: i32) -> (i32, i32) {
    %c0_i32 = arith.constant 0 : i32
    %c0_i32_0 = arith.constant 0 : i32
    %c0_i32_1 = arith.constant 0 : i32
    return %c0_i32, %c0_i32_0 : i32, i32
  }
  func.func @transform_2(%arg0: i32) -> (i32, i32) {
    %c0_i32 = arith.constant 0 : i32
    %c0_i32_0 = arith.constant 0 : i32
    %c0_i32_1 = arith.constant 0 : i32
    return %c0_i32, %c0_i32_0 : i32, i32
  }
  func.func @transform_3(%arg0: i32) -> (i32, i32) {
    %c0_i32 = arith.constant 0 : i32
    %c0_i32_0 = arith.constant 0 : i32
    %c0_i32_1 = arith.constant 0 : i32
    return %c0_i32, %c0_i32_0 : i32, i32
  }
  func.func @transform_4(%arg0: i32) -> (i32, i32) {
    %c0_i32 = arith.constant 0 : i32
    %c0_i32_0 = arith.constant 0 : i32
    %c0_i32_1 = arith.constant 0 : i32
    return %c0_i32, %c0_i32_0 : i32, i32
  }
  func.func @transform_5(%arg0: i32) -> (i32, i32) {
    %c0_i32 = arith.constant 0 : i32
    %c0_i32_0 = arith.constant 0 : i32
    %c0_i32_1 = arith.constant 0 : i32
    return %c0_i32, %c0_i32_0 : i32, i32
  }
  func.func @transform_6(%arg0: i32) -> (i32, i32) {
    %c0_i32 = arith.constant 0 : i32
    %c0_i32_0 = arith.constant 0 : i32
    %c0_i32_1 = arith.constant 0 : i32
    return %c0_i32, %c0_i32_0 : i32, i32
  }
  func.func @transform_7(%arg0: i32) -> (i32, i32) {
    %c0_i32 = arith.constant 0 : i32
    %c0_i32_0 = arith.constant 0 : i32
    %c0_i32_1 = arith.constant 0 : i32
    return %c0_i32, %c0_i32_0 : i32, i32
  }
  func.func @transform_8(%arg0: i32) -> (i32, i32) {
    %c0_i32 = arith.constant 0 : i32
    %c0_i32_0 = arith.constant 0 : i32
    %c0_i32_1 = arith.constant 0 : i32
    return %c0_i32, %c0_i32_0 : i32, i32
  }
  func.func @transform_9(%arg0: i32) -> (i32, i32, i32) {
    %c0_i32 = arith.constant 0 : i32
    %c0_i32_0 = arith.constant 0 : i32
    %c0_i32_1 = arith.constant 0 : i32
    return %arg0, %c0_i32, %c0_i32_0 : i32, i32, i32
  }
}

</mosaic_0001>

<bundles_post_ra>
// kernel: tpu_custom_call.1
= control target key start
LH: loop header
LB: loop body
LE: loop exit
PB: predicated region body
PF: predicated region fallthrough
CT: control target
= control target key end

     0   :  { %14 = vsyncpa [#allocation3], 0  ;;  %s1482_s0 = inlined_call_operand.vmem [shape: f32[2,4,256], index: 0, kind: input, shape index: {}]   ;;  %s1483_s1 = inlined_call_operand.vmem [shape: f32[4,1], index: 1, kind: input, shape index: {}]   ;;  %s1484_s2 = inlined_call_operand.vmem [shape: f32[4,1], index: 2, kind: input, shape index: {}]   ;;  %s1485_s3 = inlined_call_operand.vmem [shape: f32[4,36], index: 3, kind: input, shape index: {}]   ;;  %s1486_s4 = inlined_call_operand.vmem [shape: f32[4,1], index: 4, kind: input, shape index: {}]   ;;  %s1487_s5 = inlined_call_operand.vmem [shape: f32[4,1], index: 5, kind: input, shape index: {}]   ;;  %s1488_s6 = inlined_call_operand.vmem [shape: f32[4,1], index: 6, kind: input, shape index: {}]   ;;  %s1489_s7 = inlined_call_operand.vmem [shape: f32[4,36], index: 7, kind: input, shape index: {}]   ;;  %s1490_s8 = inlined_call_operand.vmem [shape: f32[4,1], index: 8, kind: input, shape index: {}]   ;;  %s1491_s9 = inlined_call_operand.hbm [shape: f32[2,4,256], index: 9, kind: output, shape index: {}]  }
   0x1   :  { %16 = vsyncpa [#allocation3 + $0x1], 0  ;;  %s1190_s30 = smov 0   ;;  %s1192_s10 = smov 0  }
   0x2   :  { %s1194_s11 = smov 0   ;;  %s1196_s12 = smov 0  }
   0x3 LB: > { %s1211_s13 = sadd.s32 4294967295, %s1126_s12   ;;  %s905_s14 = sadd.s32 4294967294, %s1126_s12   ;;  %s1126_s12 = sphi %s1196_s12, %s1509_s12   ;;  %s1122_s11 = sphi %s1194_s11, %s1508_s11   ;;  %s1118_s10 = sphi %s1192_s10, %s1507_s10   ;;  %s1114_s30 = sphi %s1190_s30, %s1506_s30  }
   0x4   : > { %s1215_s15 = sadd.s32 1, %s1126_s12   ;;  %s223_s16 = sadd.s32 1, %s1122_s11 }
   0x5   : > { %s220_s17 = ssub.s32 %s1126_s12, %s1215_s15  ;;  %p233_p0 = scmp.ne.s32.totalorder %s1122_s11, %s1118_s10 }
   0x6   : > { %p221_p1 = scmp.eq.s32.totalorder %s220_s17, 0  ;;  %p234_p2 = scmp.eq.s32.totalorder %s1211_s13, 1 }
   0x7   : > { %p239_p3 = scmp.ne.s32.totalorder %s1118_s10, %s1114_s30  ;;  %p240_p4 = scmp.eq.s32.totalorder %s905_s14, 1 }
   0x8   : > { %s1226_s18 = scalar_select %p221_p1, %s1122_s11, %s223_s16  }
   0x9   : > { %p1228_p5 = por %p234_p2, %p233_p0  ;;  %p1232_p6 = por %p240_p4, %p239_p3 }
   0xa   : > { %p908_p7 = scmp.ge.s32.totalorder %s1126_s12, 1  ;;  %p290_p8 = scmp.lt.s32.totalorder %s1126_s12, 3 }
   0xc   : > { %p291_p9 = pnand %p908_p7, %p290_p8 }
   0xd   : > { %v363_v0 = vld [vmem:[%s1483_s1] sm:$0xf] (!%p291_p9)  ;;  %v1128_v1 = vmov (!%p291_p9), 0   ;;  %p326_p10 = scmp.lt.s32.totalorder (!%p291_p9), %s1211_s13, 1  ;;  %v1129_v3 = vmov (!%p291_p9), 839922192   ;;  %v332_v5 = vlaneseq (!%p291_p9) }
   0xe   : > { %294 = sbr.rel (%p291_p9) target bundleno = 896 (0x380), region = 56  ;;  %991 = vset.pattern.permute.xlu0 (!%p291_p9), %v1128_v1  ;;  %1027 = vset.pattern.permute.xlu1 (!%p291_p9), %v1128_v1  ;;  %v377_v2 = vld [vmem:[%s1484_s2] sm:$0xf] (!%p291_p9)  ;;  %v369_v4 = vunpack.c.l.s4 (!%p291_p9), %v1129_v3  ;;  %s1130_s14 = smov (!%p291_p9), 17   ;;  %v1138_v22 = vmov (!%p291_p9), 0.0   ;;  %vm438_vm1 = vcmask (!%p291_p9), 7168  }
   0xf   : > { %366 = vperm.xlu0 (!%p291_p9), %991, %v363_v0   ;;  %v372_v7 = vshrl.u32 (!%p291_p9), %v332_v5, 7  ;;  %s1131_s16 = smov (!%p291_p9), 1   ;;  %s1493_s17 = smov (!%p291_p9), 127   ;;  %v606_v21 = vld [vmem:[%s1487_s5] sm:$0xf] (!%p291_p9)  ;;  %599 = vmatprep.mubr.f32.mxu0 (!%p291_p9), %v1138_v22  ;;  %v333_v25 = vand.u32 (!%p291_p9), 127, %v332_v5 }
  0x10   : > { %v370_v6 = vunpack.c.0.s8 (!%p291_p9), %v369_v4  ;;  %s1133_s21 = smov (!%p291_p9), 16   ;;  %s1492_s22 = smov (!%p291_p9), 113   ;;  %814 = vmatprep.mubr.f32.mxu1 (!%p291_p9), %v1138_v22  ;;  %v519_v23 = vld [vmem:[%s1486_s4] sm:$0xf] (!%p291_p9)  ;;  %vm400_vm6 = vcmask (!%p291_p9), 138240   ;;  %vm449_vm7 = vcmask (!%p291_p9), 1039360  }
  0x11   : > { %s1135_s23 = smov (!%p291_p9), 15   ;;  %s1136_s24 = smov (!%p291_p9), 111   ;;  %v614_v24 = vld [vmem:[%s1488_s6] sm:$0xf] (!%p291_p9)  ;;  %v334_v26 = vadd.s32 (!%p291_p9), 128, %v333_v25  ;;  %v339_v27 = vand.u32 (!%p291_p9), 15, %v333_v25 }
  0x12   : > { %v373_v8 = vsub.s32 (!%p291_p9), %v370_v6, %v372_v7  ;;  %vm415_vm8 = vcmask (!%p291_p9), 130048   ;;  %vm460_vm9 = vcmask (!%p291_p9), 924672   ;;  %vm423_vm10 = vcmask (!%p291_p9), 121856   ;;  %s1505_s27 = smov (!%p291_p9), 113  }
  0x13   : > { %380 = vperm.xlu0 (!%p291_p9), %991, %v377_v2   ;;  %v346_v28 = vand.u32 (!%p291_p9), 15, %v334_v26  ;;  %vm1282_vm2 = vcmp.ne.s32.totalorder (!%p291_p9), %v339_v27, 0  ;;  %vm1286_vm3 = vcmp.ne.s32.totalorder (!%p291_p9), %v339_v27, 15  ;;  %vm471_vm11 = vcmask (!%p291_p9), 916480  }
  0x14   : > { %vm509_vm12 = vcmask (!%p291_p9), 1043456   ;;  %vm479_vm13 = vcmask (!%p291_p9), 908288   ;;  %vm525_vm14 = vcmask (!%p291_p9), 293888  }
  0x15   : > { %s327_s25 = scalar_select %p326_p10, %s1211_s13, 1  ;;  %vm1290_vm4 = vcmp.ne.s32.totalorder %v346_v28, 0  ;;  %vm1294_vm5 = vcmp.ne.s32.totalorder %v346_v28, 15 }
  0x17   : > { %s923_s26 = sshll.u32 %s327_s25, 3  ;;  %s1137_s25 = smov 112  }
  0x18   : > { %s330_s29 = scalar_lea.vmem %s1482_s0, %s923_s26  ;;  %s1504_s26 = smov 127  }
  0x19   : > { %v1249_v11 = vld [vmem:[%s330_s29] sm:$0xff] }
  0x8e   : > { %v367_v9 = vpop.permute.xlu0 %366 }
  0x8f   : > { %v374_v10 = vrot.slane %v367_v9, %v373_v8 }
  0x91   : > { %v376_v13 = vmul.f32 %v374_v10, %v1249_v11 }
  0x92   : > { %v381_v12 = vpop.permute.xlu0 %380 }
  0x93   : > { %v388_v14 = vrot.slane %v381_v12, %v373_v8 }
  0x95   : > { %v390_v15 = vadd.f32 %v388_v14, %v376_v13 }
  0x97   : > { %vm391_vm0 = vcmp.gt.f32.partialorder %v390_v15, 0.0  ;;  %v392_v16 = vmul.f32 0.2, %v390_v15 }
  0x99   : > { %v1252_v17 = vsel %vm391_vm0, %v390_v15, %v392_v16 }
  0x9a   : > { %v1256_v18 = vcombine.high %v1252_v17, %v1252_v17 }
  0x9c   : > { %v1002_v19 = vpack.i.bf16 %v1256_v18, %v1252_v17  ;;  %v1012_v20 = vpack.i.bf16 %v1252_v17, %v1256_v18 }
  0x9e   : > { %1003 = vrot.lane.b32.xlu0 %v1002_v19, %s1130_s14  ;;  %993 = vrot.lane.b32.xlu1 %v1002_v19, %s1131_s16 }
  0xa2   : > { %1013 = vrot.lane.b32.xlu0 %v1012_v20, %s1493_s17  ;;  %998 = vrot.lane.b32.xlu1 %v1002_v19, %s1133_s21 }
  0xa6   : > { %1023 = vrot.lane.b32.xlu0 %v1012_v20, %s1492_s22  ;;  %1008 = vrot.lane.b32.xlu1 %v1002_v19, %s1135_s23 }
  0xaa   : > { %475 = vrot.lane.b32.xlu0 %v1252_v17, %s1136_s24  ;;  %1018 = vrot.lane.b32.xlu1 %v1012_v20, %s1137_s25 }
  0xae   : > { %609 = vperm.xlu0 %991, %v606_v21   ;;  %477 = vrot.lane.b32.xlu1 %v1256_v18, %s1136_s24 }
  0xb2   : > { %522 = vperm.xlu1 %1027, %v519_v23  }
  0xb6   : > { %617 = vperm.xlu1 %1027, %v614_v24  }
 0x110   : > { %v1004_v29 = vpop.permute.xlu0 %1003  ;;  %v994_v30 = vpop.permute.xlu1 %993 }
 0x111   : > { %v996_v31 = vunpack.i.h.bf16 %v994_v30  ;;  %v995_v32 = vunpack.i.l.bf16 %v994_v30  ;;  %v1006_v35 = vunpack.i.h.bf16 %v1004_v29  ;;  %v1005_v36 = vunpack.i.l.bf16 %v1004_v29 }
 0x113   : > { %v442_v39 = vsel %vm438_vm1, 0.0, %v995_v32  ;;  %v439_v42 = vsel %vm438_vm1, %v995_v32, %v996_v31  ;;  %v401_v47 = vsel %vm400_vm6, %v1005_v36, %v1006_v35  ;;  %v404_v48 = vsel %vm400_vm6, 0.0, %v1005_v36 }
 0x114   : > { %v1014_v40 = vpop.permute.xlu0 %1013  ;;  %v999_v41 = vpop.permute.xlu1 %998  ;;  %v443_v49 = vsel %vm1282_vm2, %v442_v39, 0.0  ;;  %v444_v57 = vsel %vm1290_vm4, %v439_v42, 0.0  ;;  %v410_v61 = vsel %vm1290_vm4, %v401_v47, 0.0  ;;  %v409_v5 = vsel %vm1282_vm2, %v404_v48, 0.0 }
 0x115   : > { %v1016_v43 = vunpack.i.h.bf16 %v1014_v40  ;;  %v1015_v44 = vunpack.i.l.bf16 %v1014_v40  ;;  %v1001_v45 = vunpack.i.h.bf16 %v999_v41  ;;  %v1000_v46 = vunpack.i.l.bf16 %v999_v41 }
 0x116   : > { %v493_v2 = vrot.slane %v443_v49, 4  ;;  %v494_v4 = vrot.slane %v444_v57, 4 }
 0x117   : > { %v450_v50 = vsel %vm449_vm7, %v1016_v43, %v1015_v44  ;;  %v453_v51 = vsel %vm449_vm7, %v1015_v44, 0.0  ;;  %v418_v53 = vsel %vm415_vm8, 0.0, %v1000_v46  ;;  %v416_v56 = vsel %vm415_vm8, %v1000_v46, %v1001_v45 }
 0x118   : > { %v454_v52 = vsel %vm1286_vm3, %v450_v50, 0.0  ;;  %v1024_v54 = vpop.permute.xlu0 %1023  ;;  %v1009_v55 = vpop.permute.xlu1 %1008  ;;  %v455_v58 = vsel %vm1294_vm5, %v453_v51, 0.0  ;;  %v487_v59 = vrot.slane %v418_v53, 4  ;;  %v488_v1 = vrot.slane %v416_v56, 4 }
 0x119   : > { %v1026_v60 = vunpack.i.h.bf16 %v1024_v54  ;;  %v1025_v62 = vunpack.i.l.bf16 %v1024_v54  ;;  %v1011_v63 = vunpack.i.h.bf16 %v1009_v55  ;;  %v1010_v0 = vunpack.i.l.bf16 %v1009_v55 }
 0x11a   : > { %v500_v3 = vrot.slane %v454_v52, 4  ;;  %v501_v6 = vrot.slane %v455_v58, 4  ;;  %v510_v10 = vsel %vm509_vm12, %v409_v5, %v487_v59  ;;  %v511_v19 = vsel %vm509_vm12, %v410_v61, %v488_v1 }
 0x11b   : > { %v427_v7 = vsel %vm423_vm10, 0.0, %v1010_v0  ;;  %v424_v9 = vsel %vm423_vm10, %v1010_v0, %v1011_v63  ;;  %v461_v12 = vsel %vm460_vm9, %v1026_v60, %v1025_v62  ;;  %v464_v16 = vsel %vm460_vm9, %v1025_v62, 0.0  ;;  %v735_v63 = vld [vmem:[%s1490_s8] sm:$0xf] }
 0x11c   : > { %v1019_v8 = vpop.permute.xlu1 %1018  ;;  %v433_v15 = vsel %vm1294_vm5, %v424_v9, 0.0  ;;  %v432_v21 = vsel %vm1286_vm3, %v427_v7, 0.0  ;;  %v466_v30 = vsel %vm1290_vm4, %v464_v16, 0.0  ;;  %v465_v31 = vsel %vm1282_vm2, %v461_v12, 0.0  ;;  %v476_v43 = vpop.permute.xlu0 %475 }
 0x11d   : > { %v1021_v13 = vunpack.i.h.bf16 %v1019_v8  ;;  %v1020_v14 = vunpack.i.l.bf16 %v1019_v8  ;;  %v513_v20 = vsel %vm509_vm12, %v433_v15, %v494_v4  ;;  %v512_v25 = vsel %vm509_vm12, %v432_v21, %v493_v2 }
 0x11e   : > { %v925_v24 = vpack.c.bf16 %v513_v20, %v511_v19  ;;  %v927_v29 = vpack.c.bf16 %v512_v25, %v510_v10  ;;  %v515_v32 = vsel %vm509_vm12, %v1256_v18, %v501_v6  ;;  %v514_v36 = vsel %vm509_vm12, %v1252_v17, %v500_v3  ;;  %v518_v17 = vld [vmem:[%s1485_s3] sm:$0xf] }
 0x11f   : > { %v472_v22 = vsel %vm471_vm11, %v1021_v13, %v1020_v14  ;;  %v474_v23 = vsel %vm471_vm11, %v1020_v14, 0.0 }
 0x120   : > { %v505_v26 = vrot.slane %v472_v22, 4  ;;  %v506_v27 = vrot.slane %v474_v23, 4  ;;  %v478_v28 = vpop.permute.xlu1 %477  ;;  %926 = vmatprep.subr.bf16.mxu0 %v925_v24 }
 0x121   : > { %928 = vmatpush1.bf16.msra.mxu0 %v927_v29  ;;  %v483_v40 = vsel %vm479_vm13, %v478_v28, 0.0  ;;  %v480_v44 = vsel %vm479_vm13, %v476_v43, %v478_v28 }
 0x122   : > { %v517_v35 = vsel %vm509_vm12, %v466_v30, %v506_v27  ;;  %v516_v39 = vsel %vm509_vm12, %v465_v31, %v505_v26  ;;  %v485_v45 = vsel %vm1294_vm5, %v483_v40, 0.0  ;;  %v484_v18 = vsel %vm1286_vm3, %v480_v44, 0.0 }
 0x123   : > { %v929_v41 = vpack.c.bf16 %v517_v35, %v515_v32  ;;  %v931_v42 = vpack.c.bf16 %v516_v39, %v514_v36 }
 0x125   : > { %930 = vmatprep.subr.bf16.mxu0 %v929_v41 }
 0x126   : > { %932 = vmatpush1.bf16.msra.mxu0 %v931_v42 }
 0x127   : > { %912 = vmatprep.subr.msk.mxu0 %vm509_vm12, %v485_v45 }
 0x12a   : > { %913 = vmatpush1.msk.msra.mxu0 %vm509_vm12, %v484_v18 }
 0x12b   : > { %914 = vmatmul.mubr.msk.f32.vlgmr.msra.gmra.mrb[0].mxu0 %vm525_vm14, %v518_v17 }
 0x12d   : > { %v610_v50 = vpop.permute.xlu0 %609 }
 0x131   : > { %v523_v46 = vpop.permute.xlu1 %522 }
 0x135   : > { %v618_v53 = vpop.permute.xlu1 %617 }
 0x1fe   : > { %v601_v47 = vpop.f32.mrb[0].mxu0 }
 0x1ff   : > { %v602_v48 = vadd.f32 %v601_v47, %v523_v46  ;;  %v603_v49 = vpop.f32.mrb[1].mxu0 }
 0x200   : > { %v604_v51 = vadd.f32 %v603_v49, %v523_v46 }
 0x201   : > { %v612_v52 = vmul.f32 %v610_v50, %v602_v48 }
 0x202   : > { %v613_v54 = vmul.f32 %v610_v50, %v604_v51 }
 0x203   : > { %v620_v55 = vadd.f32 %v618_v53, %v612_v52 }
 0x204   : > { %v621_v56 = vadd.f32 %v618_v53, %v613_v54 }
 0x205   : > { %vm622_vm15 = vcmp.gt.f32.partialorder %v620_v55, 0.0  ;;  %v624_v57 = vmul.f32 0.2, %v620_v55 }
 0x206   : > { %vm623_vm0 = vcmp.gt.f32.partialorder %v621_v56, 0.0  ;;  %v625_v58 = vmul.f32 0.2, %v621_v56 }
 0x207   : > { %v1354_v59 = vsel %vm622_vm15, %v620_v55, %v624_v57 }
 0x208   : > { %v1356_v60 = vsel %vm623_vm0, %v621_v56, %v625_v58 }
 0x209   : > { %v1033_v61 = vpack.i.bf16 %v1356_v60, %v1354_v59  ;;  %v1053_v62 = vpack.i.bf16 %v1354_v59, %v1356_v60 }
 0x20b   : > { %1034 = vrot.lane.b32.xlu1 %v1033_v61, %s1133_s21  ;;  %1029 = vrot.lane.b32.xlu0 %v1033_v61, %s1131_s16 }
 0x20f   : > { %1044 = vrot.lane.b32.xlu1 %v1033_v61, %s1135_s23  ;;  %1039 = vrot.lane.b32.xlu0 %v1033_v61, %s1130_s14  ;;  %s323_s23 = sand.u32 1, %s1118_s10  }
 0x210   : > { %s832_s28 = scalar_lea.sflag [#allocation3], %s323_s23 }
 0x213   : > { %1054 = vrot.lane.b32.xlu1 %v1053_v62, %s1137_s25  ;;  %1049 = vrot.lane.b32.xlu0 %v1053_v62, %s1504_s26  ;;  %s924_s25 = sshll.u32 %s1211_s13, 7  ;;  %s1139_s13 = smov [#allocation2]  }
 0x214   : > { %s1068_s14 = sshll.u32 %s1139_s13, 4  ;;  %s1069_s14 = int_to_ptr.vmem [resolvable:$false] %s1068_s14 }
 0x215   : > { %s1070_s16 = scalar_lea.vmem %s1069_s14, 256 }
 0x217   : > { %696 = vrot.lane.b32.xlu1 %v1356_v60, %s1136_s24  ;;  %1059 = vrot.lane.b32.xlu0 %v1053_v62, %s1505_s27  ;;  %s1440_s27 = scalar_lea.hbm %s1491_s9, %s924_s25 }
 0x21b   : > { %738 = vperm.xlu1 %1027, %v735_v63   ;;  %694 = vrot.lane.b32.xlu0 %v1354_v59, %s1136_s24  ;;  %s909_s24 = sshll.u32 %s323_s23, 3 }
 0x21c   : > { %s325_s29 = scalar_lea.vmem [#allocation2], %s909_s24 }
 0x21d   : > { %s846_s17 = sshll.u32 %s325_s29, 4  ;;  %s1442_s17 = int_to_ptr.vmem [resolvable:$true] %s846_s17 }
 0x21e   : > { %s1064_s21 = scalar_lea.vmem %s1442_s17, 128  ;;  %p1071_p0 = scmp.lt.s32.totalorder %s1442_s17, %s1069_s14 }
 0x21f   : > { %p1065_p11 = scmp.ne.s32.totalorder %s1442_s17, %s1064_s21  ;;  %p1072_p1 = scmp.lt.s32.totalorder %s1070_s16, %s1064_s21 }
 0x221   : > { %p1066_p12 = pnand %p1065_p11, %p1228_p5  ;;  %p1073_p2 = por %p1072_p1, %p1071_p0 }
 0x223   : > { %p1067_p13 = pneg %p1066_p12 }
 0x225   : > { %p1074_p3 = pnand %p1073_p2, %p1067_p13 }
 0x27d   : > { %v1035_v0 = vpop.permute.xlu1 %1034  ;;  %v1030_v1 = vpop.permute.xlu0 %1029 }
 0x27e   : > { %v1032_v2 = vunpack.i.h.bf16 %v1030_v1  ;;  %v1031_v3 = vunpack.i.l.bf16 %v1030_v1  ;;  %v1037_v4 = vunpack.i.h.bf16 %v1035_v0  ;;  %v1036_v5 = vunpack.i.l.bf16 %v1035_v0 }
 0x280   : > { %v661_v6 = vsel %vm438_vm1, %v1031_v3, %v1032_v2  ;;  %v664_v7 = vsel %vm438_vm1, 0.0, %v1031_v3  ;;  %v646_v14 = vsel %vm415_vm8, 0.0, %v1036_v5  ;;  %v644_v16 = vsel %vm415_vm8, %v1036_v5, %v1037_v4 }
 0x281   : > { %v1045_v8 = vpop.permute.xlu1 %1044  ;;  %v1040_v9 = vpop.permute.xlu0 %1039  ;;  %v665_v19 = vsel %vm1282_vm2, %v664_v7, 0.0  ;;  %v666_v22 = vsel %vm1290_vm4, %v661_v6, 0.0  ;;  %v705_v35 = vrot.slane %v646_v14, 4  ;;  %v706_v39 = vrot.slane %v644_v16, 4 }
 0x282   : > { %v1047_v10 = vunpack.i.h.bf16 %v1045_v8  ;;  %v1046_v12 = vunpack.i.l.bf16 %v1045_v8  ;;  %v1042_v13 = vunpack.i.h.bf16 %v1040_v9  ;;  %v1041_v15 = vunpack.i.l.bf16 %v1040_v9 }
 0x283   : > { %v711_v36 = vrot.slane %v665_v19, 4  ;;  %v712_v40 = vrot.slane %v666_v22, 4 }
 0x284   : > { %v654_v20 = vsel %vm423_vm10, 0.0, %v1046_v12  ;;  %v651_v21 = vsel %vm423_vm10, %v1046_v12, %v1047_v10  ;;  %v637_v23 = vsel %vm400_vm6, 0.0, %v1041_v15  ;;  %v634_v26 = vsel %vm400_vm6, %v1041_v15, %v1042_v13 }
 0x285   : > { %v1055_v24 = vpop.permute.xlu1 %1054  ;;  %v1050_v25 = vpop.permute.xlu0 %1049  ;;  %v656_v27 = vsel %vm1294_vm5, %v651_v21, 0.0  ;;  %v655_v28 = vsel %vm1286_vm3, %v654_v20, 0.0  ;;  %v639_v43 = vsel %vm1290_vm4, %v634_v26, 0.0  ;;  %v638_v44 = vsel %vm1282_vm2, %v637_v23, 0.0 }
 0x286   : > { %v1057_v29 = vunpack.i.h.bf16 %v1055_v24  ;;  %v1056_v30 = vunpack.i.l.bf16 %v1055_v24  ;;  %v1052_v31 = vunpack.i.h.bf16 %v1050_v25  ;;  %v1051_v32 = vunpack.i.l.bf16 %v1050_v25 }
 0x287   : > { %v729_v46 = vsel %vm509_vm12, %v656_v27, %v712_v40  ;;  %v728_v47 = vsel %vm509_vm12, %v655_v28, %v711_v36  ;;  %v727_v54 = vsel %vm509_vm12, %v639_v43, %v706_v39  ;;  %v726_v55 = vsel %vm509_vm12, %v638_v44, %v705_v35 }
 0x288   : > { %v671_v41 = vsel %vm449_vm7, %v1052_v31, %v1051_v32  ;;  %v674_v42 = vsel %vm449_vm7, %v1051_v32, 0.0  ;;  %v691_v48 = vsel %vm471_vm11, %v1057_v29, %v1056_v30  ;;  %v693_v49 = vsel %vm471_vm11, %v1056_v30, 0.0 }
 0x289   : > { %v675_v45 = vsel %vm1286_vm3, %v671_v41, 0.0  ;;  %v676_v17 = vsel %vm1294_vm5, %v674_v42, 0.0  ;;  %v1060_v18 = vpop.permute.xlu0 %1059  ;;  %v933_v56 = vpack.c.bf16 %v729_v46, %v727_v54  ;;  %v935_v57 = vpack.c.bf16 %v728_v47, %v726_v55  ;;  %v697_v62 = vpop.permute.xlu1 %696 }
 0x28a   : > { %v717_v50 = vrot.slane %v675_v45, 4  ;;  %v1062_v51 = vunpack.i.h.bf16 %v1060_v18  ;;  %v718_v52 = vrot.slane %v676_v17, 4  ;;  %v1061_v53 = vunpack.i.l.bf16 %v1060_v18 }
 0x28b   : > { %v722_v58 = vrot.slane %v691_v48, 4  ;;  %v723_v61 = vrot.slane %v693_v49, 4  ;;  %934 = vmatprep.subr.bf16.mxu1 %v933_v56  ;;  %v701_v7 = vsel %vm479_vm13, %v697_v62, 0.0  ;;  %v822_v13 = vcombine.high %v1249_v11, %v1249_v11 }
 0x28c   : > { %v681_v63 = vsel %vm460_vm9, %v1062_v51, %v1061_v53  ;;  %v684_v0 = vsel %vm460_vm9, %v1061_v53, 0.0  ;;  %936 = vmatpush1.bf16.msra.mxu1 %v935_v57  ;;  %v731_v3 = vsel %vm509_vm12, %v1356_v60, %v718_v52  ;;  %v730_v5 = vsel %vm509_vm12, %v1354_v59, %v717_v50  ;;  %v734_v59 = vld [vmem:[%s1489_s7] sm:$0xf] }
 0x28d   : > { %v686_v1 = vsel %vm1290_vm4, %v684_v0, 0.0  ;;  %v685_v2 = vsel %vm1282_vm2, %v681_v63, 0.0  ;;  %v695_v37 = vpop.permute.xlu0 %694  ;;  %v703_v33 = vsel %vm1294_vm5, %v701_v7, 0.0 }
 0x28e   : > { %v733_v4 = vsel %vm509_vm12, %v686_v1, %v723_v61  ;;  %v732_v6 = vsel %vm509_vm12, %v685_v2, %v722_v58  ;;  %v698_v10 = vsel %vm479_vm13, %v695_v37, %v697_v62 }
 0x28f   : > { %v937_v8 = vpack.c.bf16 %v733_v4, %v731_v3  ;;  %v939_v9 = vpack.c.bf16 %v732_v6, %v730_v5  ;;  %v702_v60 = vsel %vm1286_vm3, %v698_v10, 0.0 }
 0x291   : > { %938 = vmatprep.subr.bf16.mxu1 %v937_v8 }
 0x292   : > { %940 = vmatpush1.bf16.msra.mxu1 %v939_v9 }
 0x293   : > { %915 = vmatprep.subr.msk.mxu1 %vm509_vm12, %v703_v33 }
 0x296   : > { %916 = vmatpush1.msk.msra.mxu1 %vm509_vm12, %v702_v60 }
 0x297   : > { %917 = vmatmul.mubr.msk.f32.vlgmr.msra.gmra.mrb[0].mxu1 %vm525_vm14, %v734_v59 }
 0x29a   : > { %v739_v38 = vpop.permute.xlu1 %738 }
 0x36a   : > { %v816_v12 = vpop.f32.mrb[0].mxu1 }
 0x36b   : > { %v817_v14 = vadd.f32 %v816_v12, %v739_v38  ;;  %v818_v15 = vpop.f32.mrb[1].mxu1 }
 0x36c   : > { %v819_v16 = vadd.f32 %v818_v15, %v739_v38 }
 0x36d   : > { %v824_v19 = vadd.f32 %v817_v14, %v1249_v11 }
 0x36e   : > { %v825_v34 = vadd.f32 %v822_v13, %v819_v16 }
 0x370   : > { %v828_v20 = vcombine.low %v824_v19, %v825_v34 }
 0x372   : > { %830 = vst [vmem:[%s325_s29] sm:$0xff] %v828_v20 }
 0x373   : > { %1077 = shalt.err (!%p1074_p3)
}
 0x374   : > { %s1078_s23 = scalar_lea.hbm %s1440_s27, 128  ;;  %s1082_s29 = scalar_lea.hbm %s1491_s9, 256 }
 0x375   : > { %p1079_p4 = scmp.ne.s32.totalorder %s1440_s27, %s1078_s23  ;;  %p1083_p9 = scmp.lt.u32.totalorder %s1440_s27, %s1491_s9 }
 0x376   : > { %p1084_p10 = scmp.lt.u32.totalorder %s1082_s29, %s1078_s23  ;;  %p1086_p12 = scmp.lt.u32.totalorder %s1078_s23, %s1440_s27 }
 0x377   : > { %p1080_p7 = pnand %p1079_p4, %p1228_p5 }
 0x378   : > { %p1085_p11 = por %p1084_p10, %p1083_p9 }
 0x379   : > { %p1081_p8 = pneg %p1080_p7 }
 0x37a   : > { %p1087_p13 = por %p1086_p12, %p1085_p11 }
 0x37c   : > { %p1088_p0 = pnand %p1087_p13, %p1081_p8 }
 0x37e   : > { %1091 = shalt.err (!%p1088_p0)
}
 0x37f   : > { %941 = dma.vmem_to_hbm [thread:$0]  (%p1228_p5), %s1442_s17, 128, %s1440_s27, %s832_s28  }
 0x380 PF: > { %p947_p1 = scmp.ge.s32.totalorder %s1126_s12, 2  ;;  %s858_s21 = sand.u32 1, %s1114_s30  }
 0x381   : > { %s859_s13 = scalar_lea.sflag [#allocation3], %s858_s21 }
 0x382   : > { %p944_p2 = pnand %p947_p1, %p1232_p6 }
 0x384   : > { %1109 = dma.done.wait (!%p944_p2), %s859_s13, 128  }
 0x385   : > { %1111 = vsyncadd (!%p944_p2), %s859_s13, 4294967168  ;;  %p19_p3 = scmp.ge.s32.totalorder %s1215_s15, 4   ;;  %s1506_s30 = smov %s1118_s10 }
 0x386   : > { %s1507_s10 = smov %s1122_s11  ;;  %s1508_s11 = smov %s1226_s18 }
 0x387   : > { %s1509_s12 = smov %s1215_s15  ;;  %21 = sbr.rel (!%p19_p3) target bundleno = 3 (0x3), region = 91 }
 0x38e   :  { %864 = vsyncpa [#allocation3], 1 }
 0x38f   :  { %866 = vsyncpa [#allocation3 + $0x1], 1 }

</bundles_post_ra>
